<compile_context>
chip_gen: v5e
topology: v5e:2x2
jax: 0.10.0
libtpu: 0.0.40
codegen_flags: <defaults>
</compile_context>

<pallas_src>
import jax
import jax.numpy as jnp
from jax.experimental import pallas as pl
from jax.experimental.pallas import tpu as pltpu


_CIN = 128            # channel_reduce input channels (fixed by the module)
_COUT = 64            # Channel(32, 64) output channels
_LANE_TILE_TARGET = 16384   # pixels (H*W) per grid step on the lane dimension


# ----------------------------------------------------------------------------
# Fused Pallas kernel: the whole (linear) channel path as ONE matmul.
#   w_ref: (64, 128)  folded weight  (Channel o replication o channel_reduce)
#   x_ref: (128, thw) channels on sublanes, H*W pixel tile on lanes
#   o_ref: (64, thw)  lane-dense output
# ----------------------------------------------------------------------------
def _fused_channel_kernel(w_ref, x_ref, o_ref):
    o_ref[...] = jnp.dot(
        w_ref[...], x_ref[...], preferred_element_type=jnp.float32
    ).astype(o_ref.dtype)


# ----------------------------------------------------------------------------
# Generation-aware VMEM budget / lane-tile selection
# ----------------------------------------------------------------------------
def _vmem_budget_bytes():
    """Half of physical VMEM, capped at 64 MiB (v7x: 32 MiB, v5e/v6e: 64 MiB)."""
    try:
        cap = pltpu.get_tpu_info().vmem_capacity_bytes
    except Exception:
        cap = 64 * 1024 * 1024   # conservative fallback = v7x per-TensorCore VMEM
    return int(min(cap // 2, 64 * 1024 * 1024))


def _pick_lane_tile(hw, batch, dtype_bytes, vmem_budget):
    """Pixels per grid step on the lane dim (multiple of 128, or full extent)."""
    # double-buffered input (128 ch) + output (64 ch) bytes per pixel per step
    per_px = (_CIN + _COUT) * dtype_bytes * 2
    cap = max(128, ((vmem_budget * 3 // 4) // per_px) // 128 * 128)
    max_tile = min(_LANE_TILE_TARGET, cap)
    if hw <= max_tile:
        thw = hw                      # single full-extent block (any alignment)
    else:
        thw = max_tile                # multiple of 128; ragged last block is masked
    # v7x has 2 TensorCores: guarantee >=2 steps on the ("parallel","parallel") grid.
    if batch == 1 and pl.cdiv(hw, thw) == 1 and hw >= 256:
        thw = ((hw + 1) // 2 + 127) // 128 * 128
    return thw


# ----------------------------------------------------------------------------
# Wrapper: channel_reduce -> FEF stub -> Channel, as one bf16-streamed matmul
# ----------------------------------------------------------------------------
def fused_channel_path(x_nchw, w_fused, compute_dtype=jnp.bfloat16):
    """x_nchw: (B, 128, H, W);  w_fused: (64, 128);  returns (B, 64, H, W)."""
    B, C, H, W = x_nchw.shape
    assert C == _CIN, f"channel mismatch: {C} vs {_CIN}"
    HW = H * W

    dtype_bytes = jnp.dtype(compute_dtype).itemsize
    vmem_budget = _vmem_budget_bytes()
    thw = _pick_lane_tile(HW, B, dtype_bytes, vmem_budget)
    grid = (B, pl.cdiv(HW, thw))

    # NCHW kept native: channels on sublanes, H*W on lanes (free reshape).
    # bf16 streaming halves HBM traffic; accumulation stays f32 in the kernel.
    w = w_fused.astype(compute_dtype)
    x3 = x_nchw.reshape(B, C, HW).astype(compute_dtype)

    flops = 2 * B * HW * _CIN * _COUT
    bytes_accessed = (x3.size + B * _COUT * HW + w.size) * dtype_bytes

    out3 = pl.pallas_call(
        _fused_channel_kernel,
        out_shape=jax.ShapeDtypeStruct((B, _COUT, HW), compute_dtype),
        grid_spec=pltpu.PrefetchScalarGridSpec(
            num_scalar_prefetch=0,
            grid=grid,
            in_specs=[
                pl.BlockSpec((_COUT, _CIN), lambda b, t: (0, 0)),
                pl.BlockSpec((None, _CIN, thw), lambda b, t: (b, 0, t)),
            ],
            out_specs=pl.BlockSpec((None, _COUT, thw), lambda b, t: (b, 0, t)),
        ),
        compiler_params=pltpu.CompilerParams(
            dimension_semantics=("parallel", "parallel"),
            vmem_limit_bytes=vmem_budget,
        ),
        cost_estimate=pl.CostEstimate(
            flops=flops, transcendentals=0, bytes_accessed=bytes_accessed),
    )(w, x3)

    return out3.reshape(B, _COUT, H, W)


# ----------------------------------------------------------------------------
# Parameter init (shapes from __init__) + one-time weight fold
# ----------------------------------------------------------------------------
def _fold_weights(w_reduce, w_channel):
    """Fold channel_reduce (3,128) + FEF-stub replication (32,3) + Channel (64,32)
    into a single (64,128) 1x1-conv weight."""
    # TODO(synk): FEF definition not provided -> stand-in is deterministic 3->32
    # channel replication; if the real FEF is nonlinear this fold is invalid and
    # the chain must be computed unfused.
    rep = jnp.zeros((32, 3), jnp.float32).at[
        jnp.arange(32), jnp.arange(32) % 3].set(1.0)
    w2_eff = w_channel.astype(jnp.float32) @ rep              # (64, 3)
    return w2_eff @ w_reduce.astype(jnp.float32)              # (64, 128)


def init_params(key):
    k1, k2 = jax.random.split(key, 2)
    # nn.Conv2d(128, 3, kernel_size=1, bias=False) -> weight (3, 128, 1, 1)
    w_reduce = 0.05 * jax.random.normal(k1, (3, 128), dtype=jnp.float32)
    # Channel(32, 64): nn.Conv2d(32, 64, kernel_size=1, bias=False)
    w_channel = 0.05 * jax.random.normal(k2, (64, 32), dtype=jnp.float32)
    return {
        "channel_reduce": w_reduce,
        "channel": w_channel,
        # hoisted out of the per-call path (performance feedback)
        "w_fused": _fold_weights(w_reduce, w_channel),
    }


# ----------------------------------------------------------------------------
# Forward pass (mirrors student_net.forward's data flow)
# ----------------------------------------------------------------------------
def student_net_forward(params, x, c):
    # TODO(synk): Downsampling definition not provided -> identity pass-through;
    # x is therefore supplied with the 128 channels channel_reduce expects.
    out0 = x  # (B, 128, H, W)

    # channel_reduce -> FEF stub -> Channel, fused into ONE Pallas matmul kernel.
    features = fused_channel_path(out0, params["w_fused"])
    shared_out = features  # (B, 64, H, W)

    # TODO(synk): RB / RCAB / RSM(c) / Upsampling_T definitions not provided ->
    # identity pass-throughs preserving the forward's data-flow graph.
    en_features = shared_out
    rsm = en_features
    out_T1 = rsm
    out_T2 = out_T1
    out_T3 = out_T2
    final_out_T = out_T3

    out_R1 = en_features
    out_R2 = out_R1
    out_R3 = out_R2
    final_out_R = out_R3

    return (out0, shared_out, out_T1, final_out_T,
            out_R1, out_R2, out_R3, final_out_R)


# ----------------------------------------------------------------------------
# main
# ----------------------------------------------------------------------------
if __name__ == "__main__":
    key = jax.random.PRNGKey(0)
    kx, kc, kp = jax.random.split(key, 3)

    # small shapes: batch=2, channels=128 (what channel_reduce consumes), spatial=16
    x = jax.random.normal(kx, (2, 128, 16, 16), dtype=jnp.float32)
    # condition vector for RSM (unused by the stubbed RSM)
    c = jax.random.normal(kc, (2, 8), dtype=jnp.float32)

    params = init_params(kp)

    fwd = jax.jit(student_net_forward)
    outs = jax.block_until_ready(fwd(params, x, c))

    # shape sanity checks
    assert outs[0].shape == (2, 128, 16, 16)   # out0
    assert outs[1].shape == (2, 64, 16, 16)    # shared_out (after Channel 32->64)

    # reference: unfused chain in plain f32 JAX, mirroring the original op order
    reduced_ref = jnp.einsum("oc,bchw->bohw", params["channel_reduce"], x)
    feats_in_ref = jnp.tile(reduced_ref, (1, 11, 1, 1))[:, :32]
    ref = jnp.einsum("oc,bchw->bohw", params["channel"], feats_in_ref)
    got = outs[1].astype(jnp.float32)
    max_err = float(jnp.max(jnp.abs(ref - got)))
    # bf16 streaming (f32 accumulation) -> small expected numeric drift
    assert jnp.allclose(ref, got, atol=2e-2, rtol=2e-2), max_err

    print("KERNEL_OK")
</pallas_src>

<mosaic_0001>
module attributes {stable_mosaic.version = 11 : i64} {
  func.func @_fused_channel_kernel(%arg0: i32, %arg1: i32, %arg2: memref<64x128xbf16, #tpu.memory_space<vmem>>, %arg3: memref<1x128x256xbf16, #tpu.memory_space<vmem>>, %arg4: memref<1x64x256xbf16, #tpu.memory_space<vmem>>) attributes {dimension_semantics = [#tpu.dimension_semantics<parallel>, #tpu.dimension_semantics<parallel>], iteration_bounds = array<i64: 2, 1>, scalar_prefetch = 0 : i64, scratch_operands = 0 : i64, tpu.core_type = #tpu.core_type<tc>, window_params = [{pipeline_mode = #tpu.pipeline_mode<synchronous>, transform_indices = @transform_0, window_bounds = array<i64: 64, 128>}, {transform_indices = @transform_1, window_bounds = array<i64: 1, 128, 256>}, {transform_indices = @transform_2, window_bounds = array<i64: 1, 64, 256>}]} {
    %c0 = arith.constant 0 : index
    %c0_0 = arith.constant 0 : index
    %0 = vector.load %arg2[%c0, %c0_0] : memref<64x128xbf16, #tpu.memory_space<vmem>>, vector<64x128xbf16>
    %c0_1 = arith.constant 0 : index
    %c0_2 = arith.constant 0 : index
    %c0_3 = arith.constant 0 : index
    %1 = vector.load %arg3[%c0_1, %c0_2, %c0_3] : memref<1x128x256xbf16, #tpu.memory_space<vmem>>, vector<1x128x256xbf16>
    %2 = vector.shape_cast %1 : vector<1x128x256xbf16> to vector<128x256xbf16>
    %cst = arith.constant dense<0.000000e+00> : vector<64x256xf32>
    %3 = tpu.matmul %0, %2, %cst {dimension_numbers = #tpu.dot_dimension_numbers<[1], [0], [0], [1], [0, 0, 1, 1], [], []>} : vector<64x128xbf16>, vector<128x256xbf16>, vector<64x256xf32> -> vector<64x256xf32>
    %4 = arith.truncf %3 : vector<64x256xf32> to vector<64x256xbf16>
    %c0_4 = arith.constant 0 : index
    %c0_5 = arith.constant 0 : index
    %c0_6 = arith.constant 0 : index
    %5 = vector.load %arg4[%c0_4, %c0_5, %c0_6] : memref<1x64x256xbf16, #tpu.memory_space<vmem>>, vector<1x64x256xbf16>
    %6 = vector.shape_cast %5 : vector<1x64x256xbf16> to vector<64x256xbf16>
    %7 = vector.shape_cast %4 : vector<64x256xbf16> to vector<1x64x256xbf16>
    tpu.vector_store %arg4[%c0_4, %c0_5, %c0_6], %7 {strides = array<i32>} : memref<1x64x256xbf16, #tpu.memory_space<vmem>>, vector<1x64x256xbf16>,
    return
  }
  func.func @transform_0(%arg0: i32, %arg1: i32) -> (i32, i32) {
    %c0_i32 = arith.constant 0 : i32
    %c0_i32_0 = arith.constant 0 : i32
    %c0_i32_1 = arith.constant 0 : i32
    return %c0_i32, %c0_i32_0 : i32, i32
  }
  func.func @transform_1(%arg0: i32, %arg1: i32) -> (i32, i32, i32) {
    %c0_i32 = arith.constant 0 : i32
    %c0_i32_0 = arith.constant 0 : i32
    return %arg0, %c0_i32, %arg1 : i32, i32, i32
  }
  func.func @transform_2(%arg0: i32, %arg1: i32) -> (i32, i32, i32) {
    %c0_i32 = arith.constant 0 : i32
    %c0_i32_0 = arith.constant 0 : i32
    return %arg0, %c0_i32, %arg1 : i32, i32, i32
  }
}

</mosaic_0001>

<bundles_post_ra>
// kernel: student_net_forward.1
= control target key start
LH: loop header
LB: loop body
LE: loop exit
PB: predicated region body
PF: predicated region fallthrough
CT: control target
= control target key end

     0   :  { %s664_s9 = smov 0   ;;  %s666_s10 = smov 0   ;;  %s757_s0 = inlined_call_operand.vmem [shape: bf16[64,128], index: 0, kind: input, shape index: {}]   ;;  %s758_s1 = inlined_call_operand.vmem [shape: bf16[2,128,256], index: 1, kind: input, shape index: {}]   ;;  %s759_s2 = inlined_call_operand.vmem [shape: bf16[2,64,256], index: 2, kind: output, shape index: {}]  }
   0x1   :  { %s668_s11 = smov 0  }
   0x2 LB: > { %s24_s12 = sadd.s32 1, %s643_s10  ;;  %p476_p0 = scmp.ge.s32.totalorder %s647_s11, 1  ;;  %s647_s11 = sphi %s668_s11, %s12_s11   ;;  %s643_s10 = sphi %s666_s10, %s761_s10   ;;  %s639_s9 = sphi %s664_s9, %s760_s9  }
   0x3   : > { %p26_p1 = scmp.ge.s32.totalorder %s24_s12, 2  ;;  %p133_p2 = scmp.lt.s32.totalorder %s647_s11, 3 }
   0x5   : > { %s763_s12 = smov (%p26_p1, %s24_s12), 0  ;;  %p134_p3 = pnand %p476_p0, %p133_p2 }
   0x6   : > { %p164_p4 = scmp.lt.s32.totalorder (!%p134_p3), %s639_s9, 1 }
   0x7   : > { %137 = sbr.rel (%p134_p3) target bundleno = 209 (0xd1), region = 28 }
   0xc   : > { %s765_s9 = smov (!%p164_p4, %s639_s9), 1  ;;  %v565_v48 = vld [vmem:[%s757_s0] sm:$0xff]  ;;  %v567_v49 = vld [vmem:[%s757_s0 + $0x10] sm:$0xff]  ;;  %v566_v50 = vld [vmem:[%s757_s0 + $0x8] sm:$0xff] }
   0xd   : > { %s563_s13 = sshll.u32 %s765_s9, 7  ;;  %v568_v51 = vld [vmem:[%s757_s0 + $0x18] sm:$0xff]  ;;  %s564_s25 = sshll.u32 %s765_s9, 6 }
   0xe   : > { %s688_s16 = scalar_lea.vmem %s758_s1, %s563_s13  ;;  %s738_s28 = scalar_lea.vmem %s759_s2, %s564_s25 }
   0xf   : > { %v555_v0 = vld [vmem:[%s688_s16 + $0x70] sm:$0xf]  ;;  %v584_v1 = vld [vmem:[%s688_s16 + $0x74] sm:$0xf0]  ;;  %v583_v2 = vld [vmem:[%s688_s16 + $0x74] sm:$0xf] }
  0x10   : > { %v556_v3 = vor.u32 %v584_v1, %v555_v0  ;;  %v557_v4 = vld [vmem:[%s688_s16 + $0x78] sm:$0xf0]  ;;  %v547_v5 = vld [vmem:[%s688_s16 + $0x60] sm:$0xf]  ;;  %v582_v6 = vld [vmem:[%s688_s16 + $0x64] sm:$0xf0] }
  0x11   : > { %v560_v7 = vor.u32 %v583_v2, %v557_v4  ;;  %v581_v8 = vld [vmem:[%s688_s16 + $0x64] sm:$0xf]  ;;  %v549_v9 = vld [vmem:[%s688_s16 + $0x68] sm:$0xf0]  ;;  %v548_v10 = vor.u32 %v582_v6, %v547_v5  ;;  %v539_v12 = vld [vmem:[%s688_s16 + $0x50] sm:$0xf] }
  0x12   : > { %311 = vmatpush.bf16.msra.mxu0 %v556_v3  ;;  %585 = vmatpush.bf16.msra.mxu2 %v556_v3  ;;  %v552_v11 = vor.u32 %v581_v8, %v549_v9  ;;  %v580_v13 = vld [vmem:[%s688_s16 + $0x54] sm:$0xf0]  ;;  %v579_v14 = vld [vmem:[%s688_s16 + $0x54] sm:$0xf]  ;;  %v541_v15 = vld [vmem:[%s688_s16 + $0x58] sm:$0xf0] }
  0x13   : > { %340 = vmatpush.bf16.msra.mxu1 %v560_v7  ;;  %593 = vmatpush.bf16.msra.mxu3 %v560_v7  ;;  %v540_v16 = vor.u32 %v580_v13, %v539_v12  ;;  %v544_v17 = vor.u32 %v579_v14, %v541_v15  ;;  %v531_v18 = vld [vmem:[%s688_s16 + $0x40] sm:$0xf]  ;;  %v578_v19 = vld [vmem:[%s688_s16 + $0x44] sm:$0xf0]  ;;  %v577_v20 = vld [vmem:[%s688_s16 + $0x44] sm:$0xf] }
  0x14   : > { %v533_v21 = vld [vmem:[%s688_s16 + $0x48] sm:$0xf0]  ;;  %v532_v22 = vor.u32 %v578_v19, %v531_v18  ;;  %v523_v24 = vld [vmem:[%s688_s16 + $0x30] sm:$0xf]  ;;  %v576_v25 = vld [vmem:[%s688_s16 + $0x34] sm:$0xf0] }
  0x15   : > { %v536_v23 = vor.u32 %v577_v20, %v533_v21  ;;  %v575_v26 = vld [vmem:[%s688_s16 + $0x34] sm:$0xf]  ;;  %v525_v27 = vld [vmem:[%s688_s16 + $0x38] sm:$0xf0]  ;;  %v524_v28 = vor.u32 %v576_v25, %v523_v24  ;;  %v515_v30 = vld [vmem:[%s688_s16 + $0x20] sm:$0xf] }
  0x16   : > { %312 = vmatpush.bf16.msra.mxu0 %v548_v10  ;;  %586 = vmatpush.bf16.msra.mxu2 %v548_v10  ;;  %v528_v29 = vor.u32 %v575_v26, %v525_v27  ;;  %v574_v31 = vld [vmem:[%s688_s16 + $0x24] sm:$0xf0]  ;;  %v573_v32 = vld [vmem:[%s688_s16 + $0x24] sm:$0xf]  ;;  %v517_v33 = vld [vmem:[%s688_s16 + $0x28] sm:$0xf0] }
  0x17   : > { %341 = vmatpush.bf16.msra.mxu1 %v552_v11  ;;  %594 = vmatpush.bf16.msra.mxu3 %v552_v11  ;;  %v516_v34 = vor.u32 %v574_v31, %v515_v30  ;;  %v520_v35 = vor.u32 %v573_v32, %v517_v33  ;;  %v507_v36 = vld [vmem:[%s688_s16 + $0x10] sm:$0xf]  ;;  %v572_v37 = vld [vmem:[%s688_s16 + $0x14] sm:$0xf0]  ;;  %v571_v38 = vld [vmem:[%s688_s16 + $0x14] sm:$0xf] }
  0x18   : > { %v509_v39 = vld [vmem:[%s688_s16 + $0x18] sm:$0xf0]  ;;  %v508_v40 = vor.u32 %v572_v37, %v507_v36  ;;  %v499_v42 = vld [vmem:[%s688_s16] sm:$0xf]  ;;  %v570_v43 = vld [vmem:[%s688_s16 + $0x4] sm:$0xf0] }
  0x19   : > { %v512_v41 = vor.u32 %v571_v38, %v509_v39  ;;  %v569_v44 = vld [vmem:[%s688_s16 + $0x4] sm:$0xf]  ;;  %v501_v45 = vld [vmem:[%s688_s16 + $0x8] sm:$0xf0]  ;;  %v500_v46 = vor.u32 %v570_v43, %v499_v42 }
  0x1a   : > { %313 = vmatpush.bf16.msra.mxu0 %v540_v16  ;;  %587 = vmatpush.bf16.msra.mxu2 %v540_v16  ;;  %v504_v47 = vor.u32 %v569_v44, %v501_v45 }
  0x1b   : > { %342 = vmatpush.bf16.msra.mxu1 %v544_v17  ;;  %595 = vmatpush.bf16.msra.mxu3 %v544_v17 }
  0x1e   : > { %314 = vmatpush.bf16.msra.mxu0 %v532_v22  ;;  %588 = vmatpush.bf16.msra.mxu2 %v532_v22 }
  0x1f   : > { %343 = vmatpush.bf16.msra.mxu1 %v536_v23  ;;  %596 = vmatpush.bf16.msra.mxu3 %v536_v23 }
  0x22   : > { %315 = vmatpush.bf16.msra.mxu0 %v524_v28  ;;  %589 = vmatpush.bf16.msra.mxu2 %v524_v28 }
  0x23   : > { %344 = vmatpush.bf16.msra.mxu1 %v528_v29  ;;  %597 = vmatpush.bf16.msra.mxu3 %v528_v29 }
  0x26   : > { %316 = vmatpush.bf16.msra.mxu0 %v516_v34  ;;  %590 = vmatpush.bf16.msra.mxu2 %v516_v34 }
  0x27   : > { %345 = vmatpush.bf16.msra.mxu1 %v520_v35  ;;  %598 = vmatpush.bf16.msra.mxu3 %v520_v35 }
  0x2a   : > { %317 = vmatpush.bf16.msra.mxu0 %v508_v40  ;;  %591 = vmatpush.bf16.msra.mxu2 %v508_v40 }
  0x2b   : > { %346 = vmatpush.bf16.msra.mxu1 %v512_v41  ;;  %599 = vmatpush.bf16.msra.mxu3 %v512_v41 }
  0x2e   : > { %318 = vmatpush.bf16.msra.mxu0 %v500_v46  ;;  %592 = vmatpush.bf16.msra.mxu2 %v500_v46 }
  0x2f   : > { %347 = vmatpush.bf16.msra.mxu1 %v504_v47  ;;  %600 = vmatpush.bf16.msra.mxu3 %v504_v47 }
  0x31   : > { %319 = vmatmul.bf16.vlgmr.msra.gmra.mxu0 %v565_v48  ;;  %329 = vmatmul.bf16.vlgmr.msra.gmra.mxu2 %v567_v49 }
  0x32   : > { %348 = vmatmul.bf16.vlgmr.msra.gmra.mxu1 %v565_v48  ;;  %358 = vmatmul.bf16.vlgmr.msra.gmra.mxu3 %v567_v49 }
  0x41   : > { %324 = vmatmul.bf16.gmra.mxu0 %v566_v50  ;;  %334 = vmatmul.bf16.gmra.mxu2 %v568_v51 }
  0x42   : > { %353 = vmatmul.bf16.gmra.mxu1 %v566_v50  ;;  %363 = vmatmul.bf16.gmra.mxu3 %v568_v51 }
  0xae   : > { %v320_v52 = vpop.f32.mrf.mxu0 }
  0xaf   : > { %v349_v53 = vpop.f32.mrf.mxu1 }
  0xb0   : > { %v369_v54 = vpack.c.bf16 %v349_v53, %v320_v52 }
  0xb2   : > { %377 = vst [vmem:[%s738_s28] sm:$0xff] %v369_v54 }
  0xb4   : > { %v330_v55 = vpop.f32.mrf.mxu2 }
  0xb5   : > { %v359_v56 = vpop.f32.mrf.mxu3 }
  0xb6   : > { %v373_v57 = vpack.c.bf16 %v359_v56, %v330_v55  ;;  %v322_v58 = vpop.f32.mrf.mxu0 }
  0xb7   : > { %v351_v59 = vpop.f32.mrf.mxu1 }
  0xb8   : > { %381 = vst [vmem:[%s738_s28 + $0x20] sm:$0xff] %v373_v57  ;;  %v370_v60 = vpack.c.bf16 %v351_v59, %v322_v58 }
  0xba   : > { %378 = vst [vmem:[%s738_s28 + $0x8] sm:$0xff] %v370_v60 }
  0xbc   : > { %v332_v61 = vpop.f32.mrf.mxu2 }
  0xbd   : > { %v361_v62 = vpop.f32.mrf.mxu3 }
  0xbe   : > { %v374_v63 = vpack.c.bf16 %v361_v62, %v332_v61  ;;  %v325_v0 = vpop.f32.mrf.mxu0 }
  0xbf   : > { %v354_v1 = vpop.f32.mrf.mxu1 }
  0xc0   : > { %382 = vst [vmem:[%s738_s28 + $0x28] sm:$0xff] %v374_v63  ;;  %v371_v2 = vpack.c.bf16 %v354_v1, %v325_v0 }
  0xc2   : > { %379 = vst [vmem:[%s738_s28 + $0x10] sm:$0xff] %v371_v2 }
  0xc4   : > { %v335_v3 = vpop.f32.mrf.mxu2 }
  0xc5   : > { %v364_v4 = vpop.f32.mrf.mxu3 }
  0xc6   : > { %v375_v5 = vpack.c.bf16 %v364_v4, %v335_v3  ;;  %v327_v6 = vpop.f32.mrf.mxu0 }
  0xc7   : > { %v356_v7 = vpop.f32.mrf.mxu1 }
  0xc8   : > { %383 = vst [vmem:[%s738_s28 + $0x30] sm:$0xff] %v375_v5  ;;  %v372_v8 = vpack.c.bf16 %v356_v7, %v327_v6 }
  0xca   : > { %380 = vst [vmem:[%s738_s28 + $0x18] sm:$0xff] %v372_v8 }
  0xcc   : > { %v337_v9 = vpop.f32.mrf.mxu2 }
  0xcd   : > { %v366_v10 = vpop.f32.mrf.mxu3 }
  0xce   : > { %v376_v11 = vpack.c.bf16 %v366_v10, %v337_v9 }
  0xd0   : > { %384 = vst [vmem:[%s738_s28 + $0x38] sm:$0xff] %v376_v11 }
  0xd1 PF: > { %s12_s11 = sadd.s32 1, %s647_s11   ;;  %s760_s9 = smov %s643_s10 }
  0xd2   : > { %p9_p5 = scmp.ge.s32.totalorder %s12_s11, 4   ;;  %s761_s10 = smov %s763_s12 }
  0xd4   :  { %11 = sbr.rel (!%p9_p5) target bundleno = 2 (0x2), region = 58 }

</bundles_post_ra>
